<compile_context>
chip_gen: v6e
topology: v6e:2x2x1
jax: 0.10.0
libtpu: 0.0.40
codegen_flags: <defaults>
</compile_context>

<pallas_src>
import functools

import jax
import jax.numpy as jnp
from jax.experimental import pallas as pl
from jax.experimental.pallas import tpu as pltpu


def _encoder_rnn_kernel(x_ref, w_ih_t_ref, w_hh_t_ref, b_rnn_ref,
                        w_mean_t_ref, w_logvar_t_ref, b_logvar_ref,
                        noise_ref, sample_ref, entropy_ref, h_scratch,
                        *, batch, seq_len, inv_denom):
    """Fused RNN + linear heads + reparameterized sample + entropy.

    Shapes (all whole-array in VMEM):
      x_ref          (N, d_x)   with N = batch * seq_len, rows batch-major
      w_ih_t_ref     (d_x, d_h) = W_ih^T
      w_hh_t_ref     (d_h, d_h) = W_hh^T
      b_rnn_ref      (1, d_h)   = b_ih + b_hh
      w_mean_t_ref   (d_h, d_z) = W_mean^T
      w_logvar_t_ref (d_h, d_z) = W_logvar^T
      b_logvar_ref   (1, d_z)
      noise_ref      (N, d_z)   standard normal noise
      sample_ref     (N, d_z)   output
      entropy_ref    (1, 1)     output: sum(log_stddev) * inv_denom
      h_scratch      (batch, seq_len, d_h) VMEM scratch for hidden states
    """
    d_h = w_hh_t_ref.shape[0]
    n = batch * seq_len

    # --- Input projection for ALL timesteps in one MXU matmul. ------------
    x_proj = (jnp.dot(x_ref[...], w_ih_t_ref[...],
                      preferred_element_type=jnp.float32)
              + b_rnn_ref[...])                              # (N, d_h)
    x_proj = x_proj.reshape(batch, seq_len, d_h)

    # --- Sequential tanh recurrence (only h @ W_hh^T is serial). ----------
    w_hh_t = w_hh_t_ref[...]
    h = jnp.zeros((batch, d_h), jnp.float32)
    for t in range(seq_len):                                 # static unroll
        h = jnp.tanh(
            x_proj[:, t, :]
            + jnp.dot(h, w_hh_t, preferred_element_type=jnp.float32))
        h_scratch[:, t, :] = h

    out = h_scratch[...].reshape(n, d_h)                     # (N, d_h)

    # --- Linear heads over all rows at once. -------------------------------
    mu = jnp.dot(out, w_mean_t_ref[...],
                 preferred_element_type=jnp.float32)         # (N, d_z)
    logstd = (jnp.dot(out, w_logvar_t_ref[...],
                      preferred_element_type=jnp.float32)
              + b_logvar_ref[...])                           # (N, d_z)

    sample_ref[...] = (mu + jnp.exp(logstd) * noise_ref[...]
                       ).astype(sample_ref.dtype)
    entropy_ref[...] = jnp.sum(logstd, keepdims=True) * inv_denom


def encoder_amortized_rnn_forward(x, params, noise_key, time_length=20):
    """JAX/Pallas equivalent of Encoder_Amortized_RNN.forward.

    x:      (T_total, d_x) float32
    params: dict of torch-layout weights (see __main__)
    Returns (sample_seq (minibatches, seq_len, d_z), entropy scalar).
    """
    t_total, d_x = x.shape
    d_z, d_h = params["w_mean"].shape        # d_hidden == d_z in the module

    if t_total % time_length == 0:
        minibatches = t_total // time_length
        seq_len = time_length
    else:
        # Mirrors the module's fallback (data = x.view(1, -1, d_x)).
        # TODO(synk): the original .view(minibatches, time_length, d_z) on the
        # output only works when seq_len == time_length; we return the actual
        # (minibatches, seq_len, d_z) shape instead.
        minibatches = 1
        seq_len = t_total

    noise = jax.random.normal(noise_key, (t_total, d_z), dtype=x.dtype)

    # One-time, tiny weight prep: pre-transpose so the kernel does plain
    # row-major matmuls, and fold the two RNN biases into one.
    w_ih_t = params["w_ih"].T                               # (d_x, d_h)
    w_hh_t = params["w_hh"].T                               # (d_h, d_h)
    b_rnn = (params["b_ih"] + params["b_hh"]).reshape(1, d_h)
    w_mean_t = params["w_mean"].T                           # (d_h, d_z)
    w_logvar_t = params["w_logvar"].T                       # (d_h, d_z)
    b_logvar = params["b_logvar"].reshape(1, d_z)

    inv_denom = 1.0 / float(minibatches * time_length)

    kernel = functools.partial(_encoder_rnn_kernel,
                               batch=minibatches, seq_len=seq_len,
                               inv_denom=inv_denom)
    vmem = lambda: pl.BlockSpec(memory_space=pltpu.MemorySpace.VMEM)

    sample2d, entropy2d = pl.pallas_call(
        kernel,
        out_shape=(
            jax.ShapeDtypeStruct((t_total, d_z), x.dtype),
            jax.ShapeDtypeStruct((1, 1), jnp.float32),
        ),
        in_specs=[vmem() for _ in range(8)],
        out_specs=(vmem(), vmem()),
        scratch_shapes=[pltpu.VMEM((minibatches, seq_len, d_h), jnp.float32)],
    )(x, w_ih_t, w_hh_t, b_rnn, w_mean_t, w_logvar_t, b_logvar, noise)

    return sample2d.reshape(minibatches, seq_len, d_z), entropy2d[0, 0]


def _forward_reference(x, params, noise_key, time_length=20):
    """Pure-JAX reference (mirrors the PyTorch module) for validation."""
    t_total, d_x = x.shape
    d_z, d_h = params["w_mean"].shape
    if t_total % time_length == 0:
        minibatches = t_total // time_length
        seq_len = time_length
    else:
        minibatches = 1
        seq_len = t_total
    data = x.reshape(minibatches, seq_len, d_x)
    noise = jax.random.normal(noise_key, (t_total, d_z), dtype=x.dtype)

    hi = jax.lax.Precision.HIGHEST

    def step(h, x_t):
        h_new = jnp.tanh(
            jnp.dot(x_t, params["w_ih"].T, precision=hi) + params["b_ih"]
            + jnp.dot(h, params["w_hh"].T, precision=hi) + params["b_hh"])
        return h_new, h_new

    h0 = jnp.zeros((minibatches, d_h), x.dtype)
    xs = jnp.swapaxes(data, 0, 1)                       # (seq, B, d_x)
    _, hs = jax.lax.scan(step, h0, xs)                  # (seq, B, d_h)
    out = jnp.swapaxes(hs, 0, 1).reshape(-1, d_h)       # (B*seq, d_h)

    mu = jnp.dot(out, params["w_mean"].T, precision=hi)
    logstd = (jnp.dot(out, params["w_logvar"].T, precision=hi)
              + params["b_logvar"])
    sample = mu + jnp.exp(logstd) * noise
    entropy = jnp.sum(logstd) / (minibatches * time_length)
    return sample.reshape(minibatches, seq_len, d_z), entropy


if __name__ == "__main__":
    key = jax.random.PRNGKey(0)
    ks = jax.random.split(key, 8)

    d_x, d_z, time_length = 16, 32, 8      # d_hidden == d_z per the module
    t_total = 32                            # -> minibatches = 4, seq_len = 8

    x = jax.random.normal(ks[0], (t_total, d_x), dtype=jnp.float32)
    params = {
        "w_ih":     jax.random.normal(ks[1], (d_z, d_x), jnp.float32) * 0.3,
        "w_hh":     jax.random.normal(ks[2], (d_z, d_z), jnp.float32) * 0.3,
        "b_ih":     jax.random.normal(ks[3], (d_z,), jnp.float32) * 0.1,
        "b_hh":     jax.random.normal(ks[4], (d_z,), jnp.float32) * 0.1,
        "w_mean":   jax.random.normal(ks[5], (d_z, d_z), jnp.float32) * 0.3,
        "w_logvar": jax.random.normal(ks[6], (d_z, d_z), jnp.float32) * 0.3,
        "b_logvar": jax.random.normal(ks[7], (d_z,), jnp.float32) * 0.1,
    }
    noise_key = jax.random.PRNGKey(42)

    sample, entropy = encoder_amortized_rnn_forward(x, params, noise_key,
                                                    time_length)
    jax.block_until_ready((sample, entropy))

    sample_ref, entropy_ref = _forward_reference(x, params, noise_key,
                                                 time_length)

    assert sample.shape == (t_total // time_length, time_length, d_z)
    assert sample.dtype == jnp.float32
    assert entropy.shape == ()
    assert bool(jnp.allclose(sample, sample_ref, atol=1e-3, rtol=1e-3)), (
        "sample mismatch: max abs diff "
        f"{float(jnp.max(jnp.abs(sample - sample_ref)))}")
    assert bool(jnp.allclose(entropy, entropy_ref, atol=1e-3, rtol=1e-3)), (
        f"entropy mismatch: {float(entropy)} vs {float(entropy_ref)}")

    print("KERNEL_OK")
</pallas_src>

<mosaic_0001>
module attributes {stable_mosaic.version = 11 : i64} {
  func.func @_encoder_rnn_kernel(%arg0: memref<32x16xf32, #tpu.memory_space<vmem>>, %arg1: memref<16x32xf32, #tpu.memory_space<vmem>>, %arg2: memref<32x32xf32, #tpu.memory_space<vmem>>, %arg3: memref<1x32xf32, #tpu.memory_space<vmem>>, %arg4: memref<32x32xf32, #tpu.memory_space<vmem>>, %arg5: memref<32x32xf32, #tpu.memory_space<vmem>>, %arg6: memref<1x32xf32, #tpu.memory_space<vmem>>, %arg7: memref<32x32xf32, #tpu.memory_space<vmem>>, %arg8: memref<32x32xf32, #tpu.memory_space<vmem>>, %arg9: memref<1x1xf32, #tpu.memory_space<vmem>>, %arg10: memref<4x8x32xf32, #tpu.memory_space<vmem>>) attributes {dimension_semantics = [], scalar_prefetch = 0 : i64, scratch_operands = 1 : i64, tpu.core_type = #tpu.core_type<tc>} {
    %c0 = arith.constant 0 : index
    %c0_0 = arith.constant 0 : index
    %0 = vector.load %arg0[%c0, %c0_0] : memref<32x16xf32, #tpu.memory_space<vmem>>, vector<32x16xf32>
    %c0_1 = arith.constant 0 : index
    %c0_2 = arith.constant 0 : index
    %1 = vector.load %arg1[%c0_1, %c0_2] : memref<16x32xf32, #tpu.memory_space<vmem>>, vector<16x32xf32>
    %cst = arith.constant dense<0.000000e+00> : vector<32x32xf32>
    %2 = tpu.matmul %0, %1, %cst {dimension_numbers = #tpu.dot_dimension_numbers<[1], [0], [0], [1], [0, 0, 1, 1], [], []>} : vector<32x16xf32>, vector<16x32xf32>, vector<32x32xf32> -> vector<32x32xf32>
    %c0_3 = arith.constant 0 : index
    %c0_4 = arith.constant 0 : index
    %3 = vector.load %arg3[%c0_3, %c0_4] : memref<1x32xf32, #tpu.memory_space<vmem>>, vector<1x32xf32>
    %4 = vector.broadcast %3 : vector<1x32xf32> to vector<32x32xf32>
    %5 = arith.addf %2, %4 : vector<32x32xf32>
    %6 = vector.shape_cast %5 : vector<32x32xf32> to vector<4x8x32xf32>
    %c0_5 = arith.constant 0 : index
    %c0_6 = arith.constant 0 : index
    %7 = vector.load %arg2[%c0_5, %c0_6] : memref<32x32xf32, #tpu.memory_space<vmem>>, vector<32x32xf32>
    %cst_7 = arith.constant 0.000000e+00 : f32
    %8 = vector.broadcast %cst_7 : f32 to vector<4x32xf32>
    %9 = vector.extract_strided_slice %6 {offsets = [0, 0, 0], sizes = [4, 1, 32], strides = [1, 1, 1]} : vector<4x8x32xf32> to vector<4x1x32xf32>
    %10 = vector.shape_cast %9 : vector<4x1x32xf32> to vector<4x32xf32>
    %cst_8 = arith.constant dense<0.000000e+00> : vector<4x32xf32>
    %11 = tpu.matmul %8, %7, %cst_8 {dimension_numbers = #tpu.dot_dimension_numbers<[1], [0], [0], [1], [0, 0, 1, 1], [], []>} : vector<4x32xf32>, vector<32x32xf32>, vector<4x32xf32> -> vector<4x32xf32>
    %12 = arith.addf %10, %11 : vector<4x32xf32>
    %13 = math.tanh %12 : vector<4x32xf32>
    %c0_9 = arith.constant 0 : index
    %c0_10 = arith.constant 0 : index
    %c0_11 = arith.constant 0 : index
    %14 = vector.load %arg10[%c0_9, %c0_10, %c0_11] : memref<4x8x32xf32, #tpu.memory_space<vmem>>, vector<4x1x32xf32>
    %15 = vector.shape_cast %14 : vector<4x1x32xf32> to vector<4x32xf32>
    %16 = vector.shape_cast %13 : vector<4x32xf32> to vector<4x1x32xf32>
    tpu.vector_store %arg10[%c0_9, %c0_10, %c0_11], %16 {strides = array<i32>} : memref<4x8x32xf32, #tpu.memory_space<vmem>>, vector<4x1x32xf32>,
    %17 = vector.extract_strided_slice %6 {offsets = [0, 1, 0], sizes = [4, 1, 32], strides = [1, 1, 1]} : vector<4x8x32xf32> to vector<4x1x32xf32>
    %18 = vector.shape_cast %17 : vector<4x1x32xf32> to vector<4x32xf32>
    %cst_12 = arith.constant dense<0.000000e+00> : vector<4x32xf32>
    %19 = tpu.matmul %13, %7, %cst_12 {dimension_numbers = #tpu.dot_dimension_numbers<[1], [0], [0], [1], [0, 0, 1, 1], [], []>} : vector<4x32xf32>, vector<32x32xf32>, vector<4x32xf32> -> vector<4x32xf32>
    %20 = arith.addf %18, %19 : vector<4x32xf32>
    %21 = math.tanh %20 : vector<4x32xf32>
    %c0_13 = arith.constant 0 : index
    %c1 = arith.constant 1 : index
    %c0_14 = arith.constant 0 : index
    %22 = vector.load %arg10[%c0_13, %c1, %c0_14] : memref<4x8x32xf32, #tpu.memory_space<vmem>>, vector<4x1x32xf32>
    %23 = vector.shape_cast %22 : vector<4x1x32xf32> to vector<4x32xf32>
    %24 = vector.shape_cast %21 : vector<4x32xf32> to vector<4x1x32xf32>
    tpu.vector_store %arg10[%c0_13, %c1, %c0_14], %24 {strides = array<i32>} : memref<4x8x32xf32, #tpu.memory_space<vmem>>, vector<4x1x32xf32>,
    %25 = vector.extract_strided_slice %6 {offsets = [0, 2, 0], sizes = [4, 1, 32], strides = [1, 1, 1]} : vector<4x8x32xf32> to vector<4x1x32xf32>
    %26 = vector.shape_cast %25 : vector<4x1x32xf32> to vector<4x32xf32>
    %cst_15 = arith.constant dense<0.000000e+00> : vector<4x32xf32>
    %27 = tpu.matmul %21, %7, %cst_15 {dimension_numbers = #tpu.dot_dimension_numbers<[1], [0], [0], [1], [0, 0, 1, 1], [], []>} : vector<4x32xf32>, vector<32x32xf32>, vector<4x32xf32> -> vector<4x32xf32>
    %28 = arith.addf %26, %27 : vector<4x32xf32>
    %29 = math.tanh %28 : vector<4x32xf32>
    %c0_16 = arith.constant 0 : index
    %c2 = arith.constant 2 : index
    %c0_17 = arith.constant 0 : index
    %30 = vector.load %arg10[%c0_16, %c2, %c0_17] : memref<4x8x32xf32, #tpu.memory_space<vmem>>, vector<4x1x32xf32>
    %31 = vector.shape_cast %30 : vector<4x1x32xf32> to vector<4x32xf32>
    %32 = vector.shape_cast %29 : vector<4x32xf32> to vector<4x1x32xf32>
    tpu.vector_store %arg10[%c0_16, %c2, %c0_17], %32 {strides = array<i32>} : memref<4x8x32xf32, #tpu.memory_space<vmem>>, vector<4x1x32xf32>,
    %33 = vector.extract_strided_slice %6 {offsets = [0, 3, 0], sizes = [4, 1, 32], strides = [1, 1, 1]} : vector<4x8x32xf32> to vector<4x1x32xf32>
    %34 = vector.shape_cast %33 : vector<4x1x32xf32> to vector<4x32xf32>
    %cst_18 = arith.constant dense<0.000000e+00> : vector<4x32xf32>
    %35 = tpu.matmul %29, %7, %cst_18 {dimension_numbers = #tpu.dot_dimension_numbers<[1], [0], [0], [1], [0, 0, 1, 1], [], []>} : vector<4x32xf32>, vector<32x32xf32>, vector<4x32xf32> -> vector<4x32xf32>
    %36 = arith.addf %34, %35 : vector<4x32xf32>
    %37 = math.tanh %36 : vector<4x32xf32>
    %c0_19 = arith.constant 0 : index
    %c3 = arith.constant 3 : index
    %c0_20 = arith.constant 0 : index
    %38 = vector.load %arg10[%c0_19, %c3, %c0_20] : memref<4x8x32xf32, #tpu.memory_space<vmem>>, vector<4x1x32xf32>
    %39 = vector.shape_cast %38 : vector<4x1x32xf32> to vector<4x32xf32>
    %40 = vector.shape_cast %37 : vector<4x32xf32> to vector<4x1x32xf32>
    tpu.vector_store %arg10[%c0_19, %c3, %c0_20], %40 {strides = array<i32>} : memref<4x8x32xf32, #tpu.memory_space<vmem>>, vector<4x1x32xf32>,
    %41 = vector.extract_strided_slice %6 {offsets = [0, 4, 0], sizes = [4, 1, 32], strides = [1, 1, 1]} : vector<4x8x32xf32> to vector<4x1x32xf32>
    %42 = vector.shape_cast %41 : vector<4x1x32xf32> to vector<4x32xf32>
    %cst_21 = arith.constant dense<0.000000e+00> : vector<4x32xf32>
    %43 = tpu.matmul %37, %7, %cst_21 {dimension_numbers = #tpu.dot_dimension_numbers<[1], [0], [0], [1], [0, 0, 1, 1], [], []>} : vector<4x32xf32>, vector<32x32xf32>, vector<4x32xf32> -> vector<4x32xf32>
    %44 = arith.addf %42, %43 : vector<4x32xf32>
    %45 = math.tanh %44 : vector<4x32xf32>
    %c0_22 = arith.constant 0 : index
    %c4 = arith.constant 4 : index
    %c0_23 = arith.constant 0 : index
    %46 = vector.load %arg10[%c0_22, %c4, %c0_23] : memref<4x8x32xf32, #tpu.memory_space<vmem>>, vector<4x1x32xf32>
    %47 = vector.shape_cast %46 : vector<4x1x32xf32> to vector<4x32xf32>
    %48 = vector.shape_cast %45 : vector<4x32xf32> to vector<4x1x32xf32>
    tpu.vector_store %arg10[%c0_22, %c4, %c0_23], %48 {strides = array<i32>} : memref<4x8x32xf32, #tpu.memory_space<vmem>>, vector<4x1x32xf32>,
    %49 = vector.extract_strided_slice %6 {offsets = [0, 5, 0], sizes = [4, 1, 32], strides = [1, 1, 1]} : vector<4x8x32xf32> to vector<4x1x32xf32>
    %50 = vector.shape_cast %49 : vector<4x1x32xf32> to vector<4x32xf32>
    %cst_24 = arith.constant dense<0.000000e+00> : vector<4x32xf32>
    %51 = tpu.matmul %45, %7, %cst_24 {dimension_numbers = #tpu.dot_dimension_numbers<[1], [0], [0], [1], [0, 0, 1, 1], [], []>} : vector<4x32xf32>, vector<32x32xf32>, vector<4x32xf32> -> vector<4x32xf32>
    %52 = arith.addf %50, %51 : vector<4x32xf32>
    %53 = math.tanh %52 : vector<4x32xf32>
    %c0_25 = arith.constant 0 : index
    %c5 = arith.constant 5 : index
    %c0_26 = arith.constant 0 : index
    %54 = vector.load %arg10[%c0_25, %c5, %c0_26] : memref<4x8x32xf32, #tpu.memory_space<vmem>>, vector<4x1x32xf32>
    %55 = vector.shape_cast %54 : vector<4x1x32xf32> to vector<4x32xf32>
    %56 = vector.shape_cast %53 : vector<4x32xf32> to vector<4x1x32xf32>
    tpu.vector_store %arg10[%c0_25, %c5, %c0_26], %56 {strides = array<i32>} : memref<4x8x32xf32, #tpu.memory_space<vmem>>, vector<4x1x32xf32>,
    %57 = vector.extract_strided_slice %6 {offsets = [0, 6, 0], sizes = [4, 1, 32], strides = [1, 1, 1]} : vector<4x8x32xf32> to vector<4x1x32xf32>
    %58 = vector.shape_cast %57 : vector<4x1x32xf32> to vector<4x32xf32>
    %cst_27 = arith.constant dense<0.000000e+00> : vector<4x32xf32>
    %59 = tpu.matmul %53, %7, %cst_27 {dimension_numbers = #tpu.dot_dimension_numbers<[1], [0], [0], [1], [0, 0, 1, 1], [], []>} : vector<4x32xf32>, vector<32x32xf32>, vector<4x32xf32> -> vector<4x32xf32>
    %60 = arith.addf %58, %59 : vector<4x32xf32>
    %61 = math.tanh %60 : vector<4x32xf32>
    %c0_28 = arith.constant 0 : index
    %c6 = arith.constant 6 : index
    %c0_29 = arith.constant 0 : index
    %62 = vector.load %arg10[%c0_28, %c6, %c0_29] : memref<4x8x32xf32, #tpu.memory_space<vmem>>, vector<4x1x32xf32>
    %63 = vector.shape_cast %62 : vector<4x1x32xf32> to vector<4x32xf32>
    %64 = vector.shape_cast %61 : vector<4x32xf32> to vector<4x1x32xf32>
    tpu.vector_store %arg10[%c0_28, %c6, %c0_29], %64 {strides = array<i32>} : memref<4x8x32xf32, #tpu.memory_space<vmem>>, vector<4x1x32xf32>,
    %65 = vector.extract_strided_slice %6 {offsets = [0, 7, 0], sizes = [4, 1, 32], strides = [1, 1, 1]} : vector<4x8x32xf32> to vector<4x1x32xf32>
    %66 = vector.shape_cast %65 : vector<4x1x32xf32> to vector<4x32xf32>
    %cst_30 = arith.constant dense<0.000000e+00> : vector<4x32xf32>
    %67 = tpu.matmul %61, %7, %cst_30 {dimension_numbers = #tpu.dot_dimension_numbers<[1], [0], [0], [1], [0, 0, 1, 1], [], []>} : vector<4x32xf32>, vector<32x32xf32>, vector<4x32xf32> -> vector<4x32xf32>
    %68 = arith.addf %66, %67 : vector<4x32xf32>
    %69 = math.tanh %68 : vector<4x32xf32>
    %c0_31 = arith.constant 0 : index
    %c7 = arith.constant 7 : index
    %c0_32 = arith.constant 0 : index
    %70 = vector.load %arg10[%c0_31, %c7, %c0_32] : memref<4x8x32xf32, #tpu.memory_space<vmem>>, vector<4x1x32xf32>
    %71 = vector.shape_cast %70 : vector<4x1x32xf32> to vector<4x32xf32>
    %72 = vector.shape_cast %69 : vector<4x32xf32> to vector<4x1x32xf32>
    tpu.vector_store %arg10[%c0_31, %c7, %c0_32], %72 {strides = array<i32>} : memref<4x8x32xf32, #tpu.memory_space<vmem>>, vector<4x1x32xf32>,
    %c0_33 = arith.constant 0 : index
    %c0_34 = arith.constant 0 : index
    %c0_35 = arith.constant 0 : index
    %73 = vector.load %arg10[%c0_33, %c0_34, %c0_35] : memref<4x8x32xf32, #tpu.memory_space<vmem>>, vector<4x8x32xf32>
    %74 = vector.shape_cast %73 : vector<4x8x32xf32> to vector<32x32xf32>
    %c0_36 = arith.constant 0 : index
    %c0_37 = arith.constant 0 : index
    %75 = vector.load %arg4[%c0_36, %c0_37] : memref<32x32xf32, #tpu.memory_space<vmem>>, vector<32x32xf32>
    %cst_38 = arith.constant dense<0.000000e+00> : vector<32x32xf32>
    %76 = tpu.matmul %74, %75, %cst_38 {dimension_numbers = #tpu.dot_dimension_numbers<[1], [0], [0], [1], [0, 0, 1, 1], [], []>} : vector<32x32xf32>, vector<32x32xf32>, vector<32x32xf32> -> vector<32x32xf32>
    %c0_39 = arith.constant 0 : index
    %c0_40 = arith.constant 0 : index
    %77 = vector.load %arg5[%c0_39, %c0_40] : memref<32x32xf32, #tpu.memory_space<vmem>>, vector<32x32xf32>
    %cst_41 = arith.constant dense<0.000000e+00> : vector<32x32xf32>
    %78 = tpu.matmul %74, %77, %cst_41 {dimension_numbers = #tpu.dot_dimension_numbers<[1], [0], [0], [1], [0, 0, 1, 1], [], []>} : vector<32x32xf32>, vector<32x32xf32>, vector<32x32xf32> -> vector<32x32xf32>
    %c0_42 = arith.constant 0 : index
    %c0_43 = arith.constant 0 : index
    %79 = vector.load %arg6[%c0_42, %c0_43] : memref<1x32xf32, #tpu.memory_space<vmem>>, vector<1x32xf32>
    %80 = vector.broadcast %79 : vector<1x32xf32> to vector<32x32xf32>
    %81 = arith.addf %78, %80 : vector<32x32xf32>
    %82 = math.exp %81 : vector<32x32xf32>
    %c0_44 = arith.constant 0 : index
    %c0_45 = arith.constant 0 : index
    %83 = vector.load %arg7[%c0_44, %c0_45] : memref<32x32xf32, #tpu.memory_space<vmem>>, vector<32x32xf32>
    %84 = arith.mulf %82, %83 : vector<32x32xf32>
    %85 = arith.addf %76, %84 : vector<32x32xf32>
    %c0_46 = arith.constant 0 : index
    %c0_47 = arith.constant 0 : index
    %86 = vector.load %arg8[%c0_46, %c0_47] : memref<32x32xf32, #tpu.memory_space<vmem>>, vector<32x32xf32>
    tpu.vector_store %arg8[%c0_46, %c0_47], %85 {strides = array<i32>} : memref<32x32xf32, #tpu.memory_space<vmem>>, vector<32x32xf32>,
    %87 = vector.shape_cast %81 : vector<32x32xf32> to vector<1x32x32xf32>
    %cst_48 = arith.constant dense<0.000000e+00> : vector<1xf32>
    %88 = vector.multi_reduction <add>, %87, %cst_48 [1, 2] : vector<1x32x32xf32> to vector<1xf32>
    %89 = vector.shape_cast %88 : vector<1xf32> to vector<1x1x1xf32>
    %90 = vector.extract %89[0, 0, 0] : f32 from vector<1x1x1xf32>
    %91 = vector.broadcast %90 : f32 to vector<1x1xf32>
    %cst_49 = arith.constant 3.125000e-02 : f32
    %92 = vector.broadcast %cst_49 : f32 to vector<1x1xf32>
    %93 = arith.mulf %91, %92 : vector<1x1xf32>
    %c0_50 = arith.constant 0 : index
    %c0_51 = arith.constant 0 : index
    %94 = vector.load %arg9[%c0_50, %c0_51] : memref<1x1xf32, #tpu.memory_space<vmem>>, vector<1x1xf32>
    tpu.vector_store %arg9[%c0_50, %c0_51], %93 {strides = array<i32>} : memref<1x1xf32, #tpu.memory_space<vmem>>, vector<1x1xf32>,
    return
  }
}

</mosaic_0001>

<bundles_post_ra>
// kernel: tpu_custom_call.1
= control target key start
LH: loop header
LB: loop body
LE: loop exit
PB: predicated region body
PF: predicated region fallthrough
CT: control target
= control target key end

     0   :  { %15 = vsyncpa [#allocation4], 0  ;;  %s1987_s0 = inlined_call_operand.vmem [shape: f32[32,16], index: 0, kind: input, shape index: {}]   ;;  %s1988_s1 = inlined_call_operand.vmem [shape: f32[16,32], index: 1, kind: input, shape index: {}]   ;;  %s1989_s2 = inlined_call_operand.vmem [shape: f32[32,32], index: 2, kind: input, shape index: {}]   ;;  %s1990_s3 = inlined_call_operand.vmem [shape: f32[1,32], index: 3, kind: input, shape index: {}]   ;;  %s1991_s4 = inlined_call_operand.hbm [shape: f32[32,32], index: 4, kind: input, shape index: {}]   ;;  %s1992_s5 = inlined_call_operand.hbm [shape: f32[32,32], index: 5, kind: input, shape index: {}]   ;;  %s1993_s6 = inlined_call_operand.vmem [shape: f32[1,32], index: 6, kind: input, shape index: {}]   ;;  %s1994_s7 = inlined_call_operand.hbm [shape: f32[32,32], index: 7, kind: input, shape index: {}]   ;;  %s1995_s8 = inlined_call_operand.hbm [shape: f32[32,32], index: 8, kind: output, shape index: {0}]   ;;  %s1996_s9 = inlined_call_operand.hbm [shape: f32[1,1], index: 9, kind: output, shape index: {1}]  }
   0x1   :  { %16 = vsyncpa [#allocation7], 0 }
   0x2   :  { %17 = vsyncpa [#allocation5], 0 }
   0x3   :  { %18 = vsyncpa [#allocation11], 0  ;;  %s1688_s30 = smov [#allocation6]   ;;  %s1689_s11 = smov [#allocation3]  }
   0x4   :  { %s44_s10 = sshll.u32 %s1688_s30, 4  ;;  %s32_s12 = sshll.u32 %s1689_s11, 4  ;;  %s45_s10 = int_to_ptr.vmem [resolvable:$true] %s44_s10  ;;  %s33_s12 = int_to_ptr.vmem [resolvable:$true] %s32_s12 }
   0x5   :  { %s1588_s13 = scalar_lea.vmem %s45_s10, 512  ;;  %p1593_p1 = scmp.lt.s32.totalorder %s45_s10, %s45_s10 }
   0x6   :  { %p1589_p0 = scmp.ne.s32.totalorder %s45_s10, %s1588_s13  ;;  %p1594_p2 = scmp.lt.s32.totalorder %s1588_s13, %s1588_s13 }
   0x8   :  { %p1595_p3 = por %p1594_p2, %p1593_p1 }
   0xa   :  { %p1596_p4 = pnand %p1595_p3, %p1589_p0 }
   0xc   :  { %1599 = shalt.err (!%p1596_p4)
}
   0xd   :  { %s1690_s14 = smov 128   ;;  %s1691_s15 = smov 8  }
   0xe   :  { %50 = dma.hbm_to_vmem [thread:$0]  %s1992_s5, 512, %s45_s10, [#allocation7], %s1690_s14, %s1690_s14, %s1691_s15  }
   0xf   :  { %s1608_s18 = scalar_lea.vmem %s33_s12, 512  ;;  %p1613_p6 = scmp.lt.s32.totalorder %s33_s12, %s33_s12 }
  0x10   :  { %p1609_p5 = scmp.ne.s32.totalorder %s33_s12, %s1608_s18  ;;  %p1614_p7 = scmp.lt.s32.totalorder %s1608_s18, %s1608_s18 }
  0x12   :  { %p1615_p8 = por %p1614_p7, %p1613_p6 }
  0x14   :  { %p1616_p9 = pnand %p1615_p8, %p1609_p5 }
  0x16   :  { %1619 = shalt.err (!%p1616_p9)
}
  0x17   :  { %38 = dma.hbm_to_vmem [thread:$0]  %s1991_s4, 512, %s33_s12, [#allocation4], %s1690_s14, %s1690_s14, %s1691_s15  }
  0x18   :  { %s1692_s21 = smov [#allocation8]  }
  0x19   :  { %s58_s22 = sshll.u32 %s1692_s21, 4  ;;  %s59_s22 = int_to_ptr.vmem [resolvable:$true] %s58_s22 }
  0x1a   :  { %s1628_s23 = scalar_lea.vmem %s59_s22, 512  ;;  %p1633_p11 = scmp.lt.s32.totalorder %s59_s22, %s59_s22 }
  0x1b   :  { %p1629_p10 = scmp.ne.s32.totalorder %s59_s22, %s1628_s23  ;;  %p1634_p12 = scmp.lt.s32.totalorder %s1628_s23, %s1628_s23 }
  0x1d   :  { %p1635_p13 = por %p1634_p12, %p1633_p11 }
  0x1f   :  { %p1636_p0 = pnand %p1635_p13, %p1629_p10 }
  0x21   :  { %1639 = shalt.err (!%p1636_p0)
}
  0x22   :  { %64 = dma.hbm_to_vmem [thread:$0]  %s1994_s7, 512, %s59_s22, [#allocation7], %s1690_s14, %s1690_s14, %s1691_s15  }
  0x23   :  { %1680 = dma.done.wait [#allocation4], 512  }
  0x24   :  { %1681 = vsyncadd [#allocation4], 4294966784 }
  0x25   :  { %1682 = dma.done.wait [#allocation7], 1024  }
  0x26   :  { %1683 = vsyncadd [#allocation7], 4294966272  ;;  %v1693_v0 = vmov 0.0   ;;  %vm1694_vm0 = vmmov 0   ;;  %v79_v1 = vld [vmem:[%s1988_s1 + $0x8] sm:$0xff]  ;;  %v1774_v2 = vld [vmem:[%s1989_s2 + $0x18] sm:$0xff] }
  0x27   :  { %1381 = vmatprep.subr.mxu1 %v1693_v0  ;;  %1389 = vmatprep.mubr.msk.f32.mxu1 %vm1694_vm0, %v1693_v0  ;;  %v78_v3 = vld [vmem:[%s1988_s1] sm:$0xff]  ;;  %v1783_v4 = vld [vmem:[%s1989_s2 + $0x10] sm:$0xff]  ;;  %vm87_vm1 = vcmask 130048   ;;  %v75_v6 = vld [vmem:[%s1987_s0 + $0x8] sm:$0xff]  ;;  %vm279_vm2 = vcmask 253952   ;;  %vm289_vm3 = vcmask 1041409  }
  0x28   :  { %1371 = vmatprep.subr.mxu0 %v79_v1  ;;  %1382 = vmatpush3.msra.mxu1 %v1774_v2  ;;  %v74_v5 = vld [vmem:[%s1987_s0] sm:$0xff]  ;;  %v1796_v7 = vld [vmem:[%s1989_s2 + $0x8] sm:$0xff]  ;;  %v76_v8 = vld [vmem:[%s1987_s0 + $0x10] sm:$0xff]  ;;  %vm292_vm4 = vcmask 1042434   ;;  %vm295_vm5 = vcmask 1043459   ;;  %vm189_vm6 = vcmask 261120  }
  0x29   :  { %1372 = vmatpush3.msra.mxu0 %v79_v1  ;;  %1383 = vmatprep.subr.mxu1 %v1693_v0  ;;  %v1807_v9 = vld [vmem:[%s1989_s2] sm:$0xff]  ;;  %v77_v10 = vld [vmem:[%s1987_s0 + $0x18] sm:$0xff]  ;;  %vm385_vm7 = vcmask 254977   ;;  %vm488_vm8 = vcmask 256002   ;;  %vm591_vm9 = vcmask 257027   ;;  %vm695_vm10 = vcmask 258052  }
  0x2a   :  { %1373 = vmatprep.subr.mxu0 %v78_v3  ;;  %1384 = vmatpush3.msra.mxu1 %v1783_v4  ;;  %v1288_v12 = vld [vmem:[%s1990_s3] ss:$0 sm:$0xff]  ;;  %vm800_vm11 = vcmask 259077   ;;  %vm905_vm12 = vcmask 260102   ;;  %vm1010_vm13 = vcmask 261127  }
  0x2b   :  { %1374 = vmatpush3.msra.mxu0 %v78_v3  ;;  %1375 = vmatprep.mubr.msk.f32.mxu0 %vm87_vm1, %v74_v5 }
  0x2c   :  { %1385 = vmatprep.subr.mxu1 %v1693_v0  ;;  %1376 = vmatmul.mubr.msk.f32.vlgmr.msra.gmra.mxu0 %vm87_vm1, %v75_v6 }
  0x2d   :  { %1386 = vmatpush3.msra.mxu1 %v1796_v7  ;;  %1378 = vmatprep.mubr.msk.f32.mxu0 %vm87_vm1, %v76_v8 }
  0x2e   :  { %1387 = vmatprep.subr.mxu1 %v1693_v0  ;;  %1392 = vmatprep.subr.mxu0 %v1693_v0 }
  0x2f   :  { %1388 = vmatpush3.msra.mxu1 %v1807_v9  ;;  %1393 = vmatpush3.msra.mxu0 %v1774_v2 }
  0x30   :  { %1390 = vmatmul.mubr.f32.vlgmr.msra.gmra.mxu1 %v1693_v0  ;;  %1379 = vmatmul.mubr.msk.f32.gmra.mxu0 %vm87_vm1, %v77_v10 }
  0x31   :  { %1394 = vmatprep.subr.mxu0 %v1693_v0  ;;  %1400 = vmatprep.mubr.msk.f32.mxu0 %vm1694_vm0, %v1693_v0 }
  0x32   :  { %1395 = vmatpush3.msra.mxu0 %v1783_v4  ;;  %1403 = vmatprep.subr.mxu1 %v1693_v0 }
  0x33   :  { %1396 = vmatprep.subr.mxu0 %v1693_v0  ;;  %1404 = vmatpush3.msra.mxu1 %v1774_v2 }
  0x34   :  { %1397 = vmatpush3.msra.mxu0 %v1796_v7  ;;  %1405 = vmatprep.subr.mxu1 %v1693_v0 }
  0x35   :  { %1398 = vmatprep.subr.mxu0 %v1693_v0  ;;  %1406 = vmatpush3.msra.mxu1 %v1783_v4 }
  0x36   :  { %1399 = vmatpush3.msra.mxu0 %v1807_v9  ;;  %1407 = vmatprep.subr.mxu1 %v1693_v0 }
  0x37   :  { %1408 = vmatpush3.msra.mxu1 %v1796_v7  ;;  %1411 = vmatprep.mubr.msk.f32.mxu1 %vm1694_vm0, %v1693_v0 }
  0x38   :  { %1409 = vmatprep.subr.mxu1 %v1693_v0  ;;  %1414 = vmatprep.subr.mxu0 %v1693_v0 }
  0x39   :  { %1410 = vmatpush3.msra.mxu1 %v1807_v9 }
  0x3a   :  { %1425 = vmatprep.subr.mxu1 %v1693_v0 }
  0xec   :  { %v1377_v11 = vpop.f32.mrf.mxu0 }
  0xed   :  { %v1845_v15 = vadd.f32 %v1377_v11, %v1288_v12 }
  0xee   :  { %v166_v13 = vpop.f32.mrf.mxu0 }
  0xef   :  { %v1843_v14 = vadd.f32 %v1288_v12, %v166_v13 }
  0xf0   :  { %v259_v16 = vpop.f32.mrf.mxu1  ;;  %v1380_v17 = vpop.f32.mrf.mxu0 }
  0xf1   :  { %v264_v18 = vrot.slane %v259_v16, 1  ;;  %v265_v19 = vrot.slane %v259_v16, 2  ;;  %v266_v20 = vrot.slane %v259_v16, 3  ;;  %v271_v21 = vadd.f32 %v259_v16, %v1843_v14 }
  0xf2   :  { %v1848_v22 = vadd.f32 %v1380_v17, %v1288_v12  ;;  %v1391_v23 = vpop.f32.mrf.mxu1  ;;  %v176_v24 = vpop.f32.mrf.mxu0 }
  0xf3   :  { %v272_v25 = vadd.f32 %v264_v18, %v1845_v15  ;;  %1508 = vtanh.f32 %v271_v21  ;;  %v1851_v26 = vadd.f32 %v1288_v12, %v176_v24 }
  0xf4   :  { %v274_v27 = vadd.f32 %v266_v20, %v1848_v22 }
  0xf5   :  { %1510 = vtanh.f32 %v272_v25  ;;  %v273_v28 = vadd.f32 %v265_v19, %v1851_v26 }
  0xf6   :  { %1512 = vtanh.f32 %v274_v27 }
  0xf7   :  { %1514 = vtanh.f32 %v273_v28 }
 0x100   :  { %v1509_v29 = vpop.eup %1508 }
 0x101   :  { %280 = vst.msk [vmem:[#allocation2] sm:$0x1] %vm279_vm2, %v1509_v29 }
 0x102   :  { %v1511_v30 = vpop.eup %1510 }
 0x103   :  { %v1513_v31 = vpop.eup %1512  ;;  %v288_v32 = vrot.slane %v1511_v30, 7  ;;  %281 = vst.msk [vmem:[#allocation2 + $0x8] sm:$0x1] %vm279_vm2, %v1511_v30 }
 0x104   :  { %v1515_v33 = vpop.eup %1514  ;;  %283 = vst.msk [vmem:[#allocation2 + $0x18] sm:$0x1] %vm279_vm2, %v1513_v31  ;;  %v294_v36 = vrot.slane %v1513_v31, 5 }
 0x105   :  { %v291_v34 = vrot.slane %v1515_v33, 6  ;;  %282 = vst.msk [vmem:[#allocation2 + $0x10] sm:$0x1] %vm279_vm2, %v1515_v33  ;;  %v290_v35 = vsel %vm289_vm3, %v288_v32, %v1509_v29 }
 0x107   :  { %v293_v37 = vsel %vm292_vm4, %v291_v34, %v290_v35 }
 0x108   :  { %v296_v38 = vsel %vm295_vm5, %v294_v36, %v293_v37 }
 0x109   :  { %1401 = vmatmul.mubr.msk.f32.vlgmr.msra.gmra.mxu0 %vm189_vm6, %v296_v38 }
 0x10a   :  { %1415 = vmatpush3.msra.mxu0 %v1774_v2  ;;  %1422 = vmatprep.mubr.msk.f32.mxu0 %vm1694_vm0, %v1693_v0 }
 0x10b   :  { %1416 = vmatprep.subr.mxu0 %v1693_v0 }
 0x10c   :  { %1417 = vmatpush3.msra.mxu0 %v1783_v4 }
 0x10d   :  { %1418 = vmatprep.subr.mxu0 %v1693_v0 }
 0x10e   :  { %1419 = vmatpush3.msra.mxu0 %v1796_v7 }
 0x10f   :  { %1420 = vmatprep.subr.mxu0 %v1693_v0 }
 0x110   :  { %1421 = vmatpush3.msra.mxu0 %v1807_v9 }
 0x111   :  { %1436 = vmatprep.subr.mxu0 %v1693_v0 }
 0x1c9   :  { %v365_v39 = vpop.f32.mrf.mxu0 }
 0x1ca   :  { %v370_v40 = vrot.slane %v365_v39, 7  ;;  %v371_v41 = vrot.slane %v365_v39, 1  ;;  %v372_v42 = vrot.slane %v365_v39, 2  ;;  %v378_v43 = vadd.f32 %v365_v39, %v1845_v15 }
 0x1cb   :  { %v1402_v44 = vpop.f32.mrf.mxu0 }
 0x1cc   :  { %v377_v45 = vadd.f32 %v370_v40, %v1843_v14  ;;  %v379_v46 = vadd.f32 %v371_v41, %v1851_v26  ;;  %v380_v47 = vadd.f32 %v372_v42, %v1848_v22  ;;  %1516 = vtanh.f32 %v378_v43 }
 0x1ce   :  { %1518 = vtanh.f32 %v377_v45 }
 0x1cf   :  { %1520 = vtanh.f32 %v379_v46 }
 0x1d0   :  { %1522 = vtanh.f32 %v380_v47 }
 0x1d9   :  { %v1517_v48 = vpop.eup %1516 }
 0x1da   :  { %387 = vst.msk [vmem:[#allocation2 + $0x8] sm:$0x2] %vm385_vm7, %v1517_v48 }
 0x1db   :  { %v1519_v49 = vpop.eup %1518 }
 0x1dc   :  { %v1521_v50 = vpop.eup %1520  ;;  %v394_v51 = vrot.slane %v1519_v49, 1  ;;  %386 = vst.msk [vmem:[#allocation2] sm:$0x2] %vm385_vm7, %v1519_v49 }
 0x1dd   :  { %v1523_v52 = vpop.eup %1522  ;;  %v396_v53 = vrot.slane %v1521_v50, 7  ;;  %388 = vst.msk [vmem:[#allocation2 + $0x10] sm:$0x2] %vm385_vm7, %v1521_v50 }
 0x1de   :  { %v395_v54 = vsel %vm289_vm3, %v1517_v48, %v394_v51  ;;  %v398_v55 = vrot.slane %v1523_v52, 6  ;;  %389 = vst.msk [vmem:[#allocation2 + $0x18] sm:$0x2] %vm385_vm7, %v1523_v52 }
 0x1df   :  { %v397_v56 = vsel %vm292_vm4, %v396_v53, %v395_v54 }
 0x1e0   :  { %v399_v57 = vsel %vm295_vm5, %v398_v55, %v397_v56 }
 0x1e1   :  { %1412 = vmatmul.mubr.msk.f32.vlgmr.msra.gmra.mxu1 %vm189_vm6, %v399_v57 }
 0x1e2   :  { %1426 = vmatpush3.msra.mxu1 %v1774_v2  ;;  %1433 = vmatprep.mubr.msk.f32.mxu1 %vm1694_vm0, %v1693_v0 }
 0x1e3   :  { %1427 = vmatprep.subr.mxu1 %v1693_v0 }
 0x1e4   :  { %1428 = vmatpush3.msra.mxu1 %v1783_v4 }
 0x1e5   :  { %1429 = vmatprep.subr.mxu1 %v1693_v0 }
 0x1e6   :  { %1430 = vmatpush3.msra.mxu1 %v1796_v7 }
 0x1e7   :  { %1431 = vmatprep.subr.mxu1 %v1693_v0 }
 0x1e8   :  { %1432 = vmatpush3.msra.mxu1 %v1807_v9 }
 0x1e9   :  { %1447 = vmatprep.subr.mxu1 %v1693_v0 }
 0x2a1   :  { %v468_v58 = vpop.f32.mrf.mxu1 }
 0x2a2   :  { %v473_v59 = vrot.slane %v468_v58, 6  ;;  %v474_v60 = vrot.slane %v468_v58, 7  ;;  %v475_v61 = vrot.slane %v468_v58, 1  ;;  %v482_v62 = vadd.f32 %v468_v58, %v1851_v26 }
 0x2a3   :  { %v1413_v63 = vpop.f32.mrf.mxu1 }
 0x2a4   :  { %v480_v1 = vadd.f32 %v473_v59, %v1843_v14  ;;  %v481_v3 = vadd.f32 %v474_v60, %v1845_v15  ;;  %v483_v5 = vadd.f32 %v475_v61, %v1848_v22  ;;  %1524 = vtanh.f32 %v482_v62 }
 0x2a6   :  { %1526 = vtanh.f32 %v480_v1 }
 0x2a7   :  { %1528 = vtanh.f32 %v481_v3 }
 0x2a8   :  { %1530 = vtanh.f32 %v483_v5 }
 0x2b1   :  { %v1525_v6 = vpop.eup %1524 }
 0x2b2   :  { %491 = vst.msk [vmem:[#allocation2 + $0x10] sm:$0x4] %vm488_vm8, %v1525_v6 }
 0x2b3   :  { %v1527_v8 = vpop.eup %1526 }
 0x2b4   :  { %v1529_v10 = vpop.eup %1528  ;;  %v497_v11 = vrot.slane %v1527_v8, 2  ;;  %489 = vst.msk [vmem:[#allocation2] sm:$0x4] %vm488_vm8, %v1527_v8 }
 0x2b5   :  { %v1531_v12 = vpop.eup %1530  ;;  %v498_v13 = vrot.slane %v1529_v10, 1  ;;  %490 = vst.msk [vmem:[#allocation2 + $0x8] sm:$0x4] %vm488_vm8, %v1529_v10 }
 0x2b6   :  { %492 = vst.msk [vmem:[#allocation2 + $0x18] sm:$0x4] %vm488_vm8, %v1531_v12  ;;  %v501_v17 = vrot.slane %v1531_v12, 7 }
 0x2b7   :  { %v499_v16 = vsel %vm289_vm3, %v498_v13, %v497_v11 }
 0x2b8   :  { %v500_v18 = vsel %vm292_vm4, %v1525_v6, %v499_v16 }
 0x2b9   :  { %v502_v19 = vsel %vm295_vm5, %v501_v17, %v500_v18 }
 0x2ba   :  { %1423 = vmatmul.mubr.msk.f32.vlgmr.msra.gmra.mxu0 %vm189_vm6, %v502_v19 }
 0x2bb   :  { %1437 = vmatpush3.msra.mxu0 %v1774_v2  ;;  %1444 = vmatprep.mubr.msk.f32.mxu0 %vm1694_vm0, %v1693_v0 }
 0x2bc   :  { %1438 = vmatprep.subr.mxu0 %v1693_v0 }
 0x2bd   :  { %1439 = vmatpush3.msra.mxu0 %v1783_v4 }
 0x2be   :  { %1440 = vmatprep.subr.mxu0 %v1693_v0 }
 0x2bf   :  { %1441 = vmatpush3.msra.mxu0 %v1796_v7 }
 0x2c0   :  { %1442 = vmatprep.subr.mxu0 %v1693_v0 }
 0x2c1   :  { %1443 = vmatpush3.msra.mxu0 %v1807_v9 }
 0x2c2   :  { %1458 = vmatprep.subr.mxu0 %v1693_v0 }
 0x37a   :  { %v571_v20 = vpop.f32.mrf.mxu0 }
 0x37b   :  { %v576_v21 = vrot.slane %v571_v20, 5  ;;  %v577_v23 = vrot.slane %v571_v20, 6  ;;  %v578_v24 = vrot.slane %v571_v20, 7  ;;  %v586_v25 = vadd.f32 %v571_v20, %v1848_v22 }
 0x37c   :  { %v1424_v27 = vpop.f32.mrf.mxu0 }
 0x37d   :  { %v583_v28 = vadd.f32 %v576_v21, %v1843_v14  ;;  %v584_v29 = vadd.f32 %v577_v23, %v1845_v15  ;;  %v585_v30 = vadd.f32 %v578_v24, %v1851_v26  ;;  %1532 = vtanh.f32 %v586_v25 }
 0x37f   :  { %1534 = vtanh.f32 %v583_v28 }
 0x380   :  { %1536 = vtanh.f32 %v584_v29 }
 0x381   :  { %1538 = vtanh.f32 %v585_v30 }
 0x38a   :  { %v1533_v31 = vpop.eup %1532 }
 0x38b   :  { %595 = vst.msk [vmem:[#allocation2 + $0x18] sm:$0x8] %vm591_vm9, %v1533_v31 }
 0x38c   :  { %v1535_v32 = vpop.eup %1534 }
 0x38d   :  { %v1537_v33 = vpop.eup %1536  ;;  %v600_v34 = vrot.slane %v1535_v32, 3  ;;  %592 = vst.msk [vmem:[#allocation2] sm:$0x8] %vm591_vm9, %v1535_v32 }
 0x38e   :  { %v1539_v35 = vpop.eup %1538  ;;  %v601_v36 = vrot.slane %v1537_v33, 2  ;;  %593 = vst.msk [vmem:[#allocation2 + $0x8] sm:$0x8] %vm591_vm9, %v1537_v33 }
 0x38f   :  { %v603_v37 = vrot.slane %v1539_v35, 1  ;;  %594 = vst.msk [vmem:[#allocation2 + $0x10] sm:$0x8] %vm591_vm9, %v1539_v35 }
 0x390   :  { %v602_v38 = vsel %vm289_vm3, %v601_v36, %v600_v34 }
 0x391   :  { %v604_v39 = vsel %vm292_vm4, %v603_v37, %v602_v38 }
 0x392   :  { %v605_v40 = vsel %vm295_vm5, %v1533_v31, %v604_v39 }
 0x393   :  { %1434 = vmatmul.mubr.msk.f32.vlgmr.msra.gmra.mxu1 %vm189_vm6, %v605_v40 }
 0x394   :  { %1448 = vmatpush3.msra.mxu1 %v1774_v2  ;;  %1455 = vmatprep.mubr.msk.f32.mxu1 %vm1694_vm0, %v1693_v0 }
 0x395   :  { %1449 = vmatprep.subr.mxu1 %v1693_v0 }
 0x396   :  { %1450 = vmatpush3.msra.mxu1 %v1783_v4 }
 0x397   :  { %1451 = vmatprep.subr.mxu1 %v1693_v0 }
 0x398   :  { %1452 = vmatpush3.msra.mxu1 %v1796_v7 }
 0x399   :  { %1453 = vmatprep.subr.mxu1 %v1693_v0 }
 0x39a   :  { %1454 = vmatpush3.msra.mxu1 %v1807_v9 }
 0x453   :  { %v674_v41 = vpop.f32.mrf.mxu1 }
 0x454   :  { %v679_v42 = vrot.slane %v674_v41, 4  ;;  %v680_v43 = vrot.slane %v674_v41, 5  ;;  %v681_v44 = vrot.slane %v674_v41, 6  ;;  %v682_v45 = vrot.slane %v674_v41, 7 }
 0x455   :  { %v1435_v46 = vpop.f32.mrf.mxu1 }
 0x456   :  { %v687_v47 = vadd.f32 %v679_v42, %v1843_v14  ;;  %v688_v48 = vadd.f32 %v680_v43, %v1845_v15  ;;  %v689_v49 = vadd.f32 %v681_v44, %v1851_v26  ;;  %v690_v50 = vadd.f32 %v682_v45, %v1848_v22  ;;  %v1026_v44 = vld [vmem:[#allocation6 + $0x18] sm:$0xff]  ;;  %v1025_v46 = vld [vmem:[#allocation6 + $0x10] sm:$0xff] }
 0x457   :  { %v1022_v45 = vld [vmem:[#allocation3 + $0x18] sm:$0xff]  ;;  %1469 = vmatprep.subr.mxu1 %v1026_v44 }
 0x458   :  { %1540 = vtanh.f32 %v687_v47  ;;  %v1021_v47 = vld [vmem:[#allocation3 + $0x10] sm:$0xff] }
 0x459   :  { %1542 = vtanh.f32 %v688_v48  ;;  %v1024_v48 = vld [vmem:[#allocation6 + $0x8] sm:$0xff] }
 0x45a   :  { %1544 = vtanh.f32 %v689_v49  ;;  %v1020_v49 = vld [vmem:[#allocation3 + $0x8] sm:$0xff] }
 0x45b   :  { %1546 = vtanh.f32 %v690_v50  ;;  %v1023_v50 = vld [vmem:[#allocation6] sm:$0xff] }
 0x465   :  { %v1541_v51 = vpop.eup %1540 }
 0x466   :  { %v1543_v52 = vpop.eup %1542  ;;  %v704_v53 = vrot.slane %v1541_v51, 4  ;;  %696 = vst.msk [vmem:[#allocation2] sm:$0x10] %vm695_vm10, %v1541_v51  ;;  %v1019_v51 = vld [vmem:[#allocation3] sm:$0xff] }
 0x467   :  { %v1545_v54 = vpop.eup %1544  ;;  %v705_v55 = vrot.slane %v1543_v52, 3  ;;  %697 = vst.msk [vmem:[#allocation2 + $0x8] sm:$0x10] %vm695_vm10, %v1543_v52 }
 0x468   :  { %v1547_v56 = vpop.eup %1546  ;;  %v707_v57 = vrot.slane %v1545_v54, 2  ;;  %698 = vst.msk [vmem:[#allocation2 + $0x10] sm:$0x10] %vm695_vm10, %v1545_v54 }
 0x469   :  { %v706_v58 = vsel %vm289_vm3, %v705_v55, %v704_v53  ;;  %v709_v59 = vrot.slane %v1547_v56, 1  ;;  %699 = vst.msk [vmem:[#allocation2 + $0x18] sm:$0x10] %vm695_vm10, %v1547_v56 }
 0x46a   :  { %v708_v60 = vsel %vm292_vm4, %v707_v57, %v706_v58 }
 0x46b   :  { %v710_v61 = vsel %vm295_vm5, %v709_v59, %v708_v60 }
 0x46c   :  { %1445 = vmatmul.mubr.msk.f32.vlgmr.msra.gmra.mxu0 %vm189_vm6, %v710_v61 }
 0x46d   :  { %1459 = vmatpush3.msra.mxu0 %v1774_v2  ;;  %1466 = vmatprep.mubr.msk.f32.mxu0 %vm1694_vm0, %v1693_v0 }
 0x46e   :  { %1460 = vmatprep.subr.mxu0 %v1693_v0 }
 0x46f   :  { %1461 = vmatpush3.msra.mxu0 %v1783_v4 }
 0x470   :  { %1462 = vmatprep.subr.mxu0 %v1693_v0 }
 0x471   :  { %1463 = vmatpush3.msra.mxu0 %v1796_v7 }
 0x472   :  { %1464 = vmatprep.subr.mxu0 %v1693_v0 }
 0x473   :  { %1465 = vmatpush3.msra.mxu0 %v1807_v9 }
 0x474   :  { %1483 = vmatprep.subr.mxu0 %v1022_v45 }
 0x52c   :  { %v779_v62 = vpop.f32.mrf.mxu0 }
 0x52d   :  { %v784_v63 = vrot.slane %v779_v62, 3  ;;  %v785_v1 = vrot.slane %v779_v62, 4  ;;  %v786_v3 = vrot.slane %v779_v62, 5  ;;  %v787_v2 = vrot.slane %v779_v62, 6 }
 0x52e   :  { %v1446_v5 = vpop.f32.mrf.mxu0 }
 0x52f   :  { %v792_v6 = vadd.f32 %v784_v63, %v1843_v14  ;;  %v793_v8 = vadd.f32 %v785_v1, %v1845_v15  ;;  %v794_v4 = vadd.f32 %v786_v3, %v1851_v26  ;;  %v795_v10 = vadd.f32 %v787_v2, %v1848_v22  ;;  %v1300_v2 = vld [vmem:[%s1993_s6] ss:$0 sm:$0xff]  ;;  %s1695_s6 = smov [#allocation9]  }
 0x530   :  { %s1261_s5 = sshll.u32 %s1695_s6, 4  ;;  %s1262_s5 = int_to_ptr.vmem [resolvable:$true] %s1261_s5 }
 0x531   :  { %1548 = vtanh.f32 %v792_v6  ;;  %s1640_s24 = scalar_lea.vmem %s1262_s5, 512  ;;  %p1645_p2 = scmp.lt.s32.totalorder %s1262_s5, %s1262_s5 }
 0x532   :  { %1550 = vtanh.f32 %v793_v8  ;;  %p1641_p1 = scmp.ne.s32.totalorder %s1262_s5, %s1640_s24  ;;  %p1646_p3 = scmp.lt.s32.totalorder %s1640_s24, %s1640_s24 }
 0x533   :  { %1552 = vtanh.f32 %v794_v4 }
 0x534   :  { %1554 = vtanh.f32 %v795_v10  ;;  %p1647_p4 = por %p1646_p3, %p1645_p2 }
 0x536   :  { %p1648_p5 = pnand %p1647_p4, %p1641_p1 }
 0x53e   :  { %v1549_v0 = vpop.eup %1548 }
 0x53f   :  { %v1551_v7 = vpop.eup %1550  ;;  %v809_v9 = vrot.slane %v1549_v0, 5  ;;  %801 = vst.msk [vmem:[#allocation2] sm:$0x20] %vm800_vm11, %v1549_v0 }
 0x540   :  { %v1553_v11 = vpop.eup %1552  ;;  %v810_v12 = vrot.slane %v1551_v7, 4  ;;  %802 = vst.msk [vmem:[#allocation2 + $0x8] sm:$0x20] %vm800_vm11, %v1551_v7 }
 0x541   :  { %v1555_v13 = vpop.eup %1554  ;;  %v812_v16 = vrot.slane %v1553_v11, 3  ;;  %803 = vst.msk [vmem:[#allocation2 + $0x10] sm:$0x20] %vm800_vm11, %v1553_v11 }
 0x542   :  { %v811_v17 = vsel %vm289_vm3, %v810_v12, %v809_v9  ;;  %v814_v18 = vrot.slane %v1555_v13, 2  ;;  %804 = vst.msk [vmem:[#allocation2 + $0x18] sm:$0x20] %vm800_vm11, %v1555_v13 }
 0x543   :  { %v813_v19 = vsel %vm292_vm4, %v812_v16, %v811_v17 }
 0x544   :  { %v815_v20 = vsel %vm295_vm5, %v814_v18, %v813_v19 }
 0x545   :  { %1456 = vmatmul.mubr.msk.f32.vlgmr.msra.gmra.mxu1 %vm189_vm6, %v815_v20 }
 0x546   :  { %1470 = vmatpush3.msra.mxu1 %v1026_v44 }
 0x547   :  { %1471 = vmatprep.subr.mxu1 %v1025_v46 }
 0x548   :  { %1472 = vmatpush3.msra.mxu1 %v1025_v46 }
 0x549   :  { %1473 = vmatprep.subr.mxu1 %v1024_v48 }
 0x54a   :  { %1474 = vmatpush3.msra.mxu1 %v1024_v48 }
 0x54b   :  { %1475 = vmatprep.subr.mxu1 %v1023_v50 }
 0x54c   :  { %1476 = vmatpush3.msra.mxu1 %v1023_v50 }
 0x605   :  { %v884_v21 = vpop.f32.mrf.mxu1 }
 0x606   :  { %v889_v23 = vrot.slane %v884_v21, 2  ;;  %v890_v24 = vrot.slane %v884_v21, 3  ;;  %v891_v25 = vrot.slane %v884_v21, 4  ;;  %v892_v27 = vrot.slane %v884_v21, 5 }
 0x607   :  { %v1457_v28 = vpop.f32.mrf.mxu1 }
 0x608   :  { %v897_v29 = vadd.f32 %v889_v23, %v1843_v14  ;;  %v898_v30 = vadd.f32 %v890_v24, %v1845_v15  ;;  %v899_v31 = vadd.f32 %v891_v25, %v1851_v26  ;;  %v900_v32 = vadd.f32 %v892_v27, %v1848_v22  ;;  %v1140_v27 = vld [vmem:[#allocation8 + $0x8] sm:$0xff] }
 0x60a   :  { %1556 = vtanh.f32 %v897_v29  ;;  %v1139_v29 = vld [vmem:[#allocation8] sm:$0xff] }
 0x60b   :  { %1558 = vtanh.f32 %v898_v30 }
 0x60c   :  { %1560 = vtanh.f32 %v899_v31 }
 0x60d   :  { %1562 = vtanh.f32 %v900_v32 }
 0x617   :  { %v1557_v33 = vpop.eup %1556 }
 0x618   :  { %v1559_v34 = vpop.eup %1558  ;;  %v914_v35 = vrot.slane %v1557_v33, 6  ;;  %906 = vst.msk [vmem:[#allocation2] sm:$0x40] %vm905_vm12, %v1557_v33  ;;  %v1142_v33 = vld [vmem:[#allocation8 + $0x18] sm:$0xff] }
 0x619   :  { %v1561_v36 = vpop.eup %1560  ;;  %v915_v37 = vrot.slane %v1559_v34, 5  ;;  %907 = vst.msk [vmem:[#allocation2 + $0x8] sm:$0x40] %vm905_vm12, %v1559_v34 }
 0x61a   :  { %v1563_v38 = vpop.eup %1562  ;;  %v917_v39 = vrot.slane %v1561_v36, 4  ;;  %908 = vst.msk [vmem:[#allocation2 + $0x10] sm:$0x40] %vm905_vm12, %v1561_v36 }
 0x61b   :  { %v916_v40 = vsel %vm289_vm3, %v915_v37, %v914_v35  ;;  %v919_v41 = vrot.slane %v1563_v38, 3  ;;  %909 = vst.msk [vmem:[#allocation2 + $0x18] sm:$0x40] %vm905_vm12, %v1563_v38  ;;  %v1141_v38 = vld [vmem:[#allocation8 + $0x10] sm:$0xff] }
 0x61c   :  { %v918_v42 = vsel %vm292_vm4, %v917_v39, %v916_v40 }
 0x61d   :  { %v920_v43 = vsel %vm295_vm5, %v919_v41, %v918_v42 }
 0x61e   :  { %1467 = vmatmul.mubr.msk.f32.vlgmr.msra.gmra.mxu0 %vm189_vm6, %v920_v43 }
 0x61f   :  { %1484 = vmatpush3.msra.mxu0 %v1022_v45 }
 0x620   :  { %1485 = vmatprep.subr.mxu0 %v1021_v47 }
 0x621   :  { %1486 = vmatpush3.msra.mxu0 %v1021_v47 }
 0x622   :  { %1487 = vmatprep.subr.mxu0 %v1020_v49 }
 0x623   :  { %1488 = vmatpush3.msra.mxu0 %v1020_v49 }
 0x624   :  { %1489 = vmatprep.subr.mxu0 %v1019_v51 }
 0x625   :  { %1490 = vmatpush3.msra.mxu0 %v1019_v51 }
 0x6de   :  { %v989_v52 = vpop.f32.mrf.mxu0 }
 0x6df   :  { %v994_v53 = vrot.slane %v989_v52, 1  ;;  %v995_v54 = vrot.slane %v989_v52, 2  ;;  %v996_v55 = vrot.slane %v989_v52, 3  ;;  %v997_v56 = vrot.slane %v989_v52, 4 }
 0x6e0   :  { %v1468_v57 = vpop.f32.mrf.mxu0 }
 0x6e1   :  { %v1002_v58 = vadd.f32 %v994_v53, %v1843_v14  ;;  %v1003_v59 = vadd.f32 %v995_v54, %v1845_v15  ;;  %v1004_v60 = vadd.f32 %v996_v55, %v1851_v26  ;;  %v1005_v61 = vadd.f32 %v997_v56, %v1848_v22 }
 0x6e3   :  { %1564 = vtanh.f32 %v1002_v58 }
 0x6e4   :  { %1566 = vtanh.f32 %v1003_v59 }
 0x6e5   :  { %1568 = vtanh.f32 %v1004_v60 }
 0x6e6   :  { %1570 = vtanh.f32 %v1005_v61 }
 0x6f0   :  { %v1565_v62 = vpop.eup %1564 }
 0x6f1   :  { %v1567_v63 = vpop.eup %1566  ;;  %1011 = vst.msk [vmem:[#allocation2] sm:$0x80] %vm1010_vm13, %v1565_v62 }
 0x6f2   :  { %v1569_v1 = vpop.eup %1568  ;;  %1012 = vst.msk [vmem:[#allocation2 + $0x8] sm:$0x80] %vm1010_vm13, %v1567_v63 }
 0x6f3   :  { %v1571_v3 = vpop.eup %1570  ;;  %1013 = vst.msk [vmem:[#allocation2 + $0x10] sm:$0x80] %vm1010_vm13, %v1569_v1 }
 0x6f4   :  { %1014 = vst.msk [vmem:[#allocation2 + $0x18] sm:$0x80] %vm1010_vm13, %v1571_v3 }
 0x6f8   :  { %v1015_v14 = vld [vmem:[#allocation2] sm:$0xff] }
 0x6f9   :  { %1477 = vmatprep.mubr.msk.f32.mxu1 %vm189_vm6, %v1015_v14  ;;  %1491 = vmatprep.mubr.msk.f32.mxu0 %vm189_vm6, %v1015_v14  ;;  %v1016_v15 = vld [vmem:[#allocation2 + $0x8] sm:$0xff] }
 0x6fa   :  { %1478 = vmatmul.mubr.msk.f32.vlgmr.msra.gmra.mxu1 %vm189_vm6, %v1016_v15  ;;  %1492 = vmatmul.mubr.msk.f32.vlgmr.msra.gmra.mxu0 %vm189_vm6, %v1016_v15  ;;  %v1017_v22 = vld [vmem:[#allocation2 + $0x10] sm:$0xff] }
 0x6fb   :  { %1480 = vmatprep.mubr.msk.f32.mxu1 %vm189_vm6, %v1017_v22  ;;  %1494 = vmatprep.mubr.msk.f32.mxu0 %vm189_vm6, %v1017_v22  ;;  %v1018_v26 = vld [vmem:[#allocation2 + $0x18] sm:$0xff] }
 0x6fe   :  { %1481 = vmatmul.mubr.msk.f32.gmra.mxu1 %vm189_vm6, %v1018_v26  ;;  %1495 = vmatmul.mubr.msk.f32.gmra.mxu0 %vm189_vm6, %v1018_v26 }
 0x7ba   :  { %v1479_v5 = vpop.f32.mrf.mxu1  ;;  %v1493_v25 = vpop.f32.mrf.mxu0 }
 0x7bb   :  { %v1118_v6 = vadd.f32 %v1479_v5, %v1300_v2 }
 0x7bc   :  { %v1112_v8 = vpop.f32.mrf.mxu1  ;;  %v1213_v30 = vpop.f32.mrf.mxu0 }
 0x7bd   :  { %v1133_v4 = vmul.f32 1.442695, %v1118_v6  ;;  %v1113_v10 = vadd.f32 %v1300_v2, %v1112_v8  ;;  %v1237_v13 = vsel %vm189_vm6, %v1118_v6, 0.0 }
 0x7be   :  { %v1482_v0 = vpop.f32.mrf.mxu1  ;;  %v1496_v37 = vpop.f32.mrf.mxu0 }
 0x7bf   :  { %1572 = vpow2.f32 %v1133_v4  ;;  %v1131_v7 = vmul.f32 1.442695, %v1113_v10  ;;  %v1236_v9 = vsel %vm189_vm6, %v1113_v10, 0.0  ;;  %v1128_v11 = vadd.f32 %v1482_v0, %v1300_v2 }
 0x7c0   :  { %v1122_v12 = vpop.f32.mrf.mxu1  ;;  %v1238_v18 = vadd.f32 %v1237_v13, %v1236_v9  ;;  %v1223_v44 = vpop.f32.mrf.mxu0 }
 0x7c1   :  { %1574 = vpow2.f32 %v1131_v7  ;;  %v1137_v16 = vmul.f32 1.442695, %v1128_v11  ;;  %v1123_v17 = vadd.f32 %v1300_v2, %v1122_v12  ;;  %v1241_v23 = vsel %vm189_vm6, %v1128_v11, 0.0 }
 0x7c3   :  { %1576 = vpow2.f32 %v1137_v16  ;;  %v1135_v19 = vmul.f32 1.442695, %v1123_v17  ;;  %v1239_v20 = vsel %vm189_vm6, %v1123_v17, 0.0 }
 0x7c4   :  { %v1240_v21 = vadd.f32 %v1239_v20, %v1238_v18 }
 0x7c5   :  { %1578 = vpow2.f32 %v1135_v19 }
 0x7c6   :  { %v1242_v24 = vadd.f32 %v1241_v23, %v1240_v21 }
 0x7c8   :  { %1243 = vadd.xlane.f32.xlu0 %v1242_v24 }
 0x7cc   :  { %v1573_v28 = vpop.eup %1572 }
 0x7cd   :  { %v1144_v31 = vmul.f32 %v1573_v28, %v1140_v27 }
 0x7ce   :  { %v1575_v32 = vpop.eup %1574 }
 0x7cf   :  { %v1219_v34 = vadd.f32 %v1493_v25, %v1144_v31  ;;  %v1143_v35 = vmul.f32 %v1575_v32, %v1139_v29 }
 0x7d0   :  { %v1577_v36 = vpop.eup %1576 }
 0x7d1   :  { %1233 = vst.msk [vmem:[#allocation9 + $0x8] sm:$0xff] %vm189_vm6, %v1219_v34  ;;  %v1214_v39 = vadd.f32 %v1213_v30, %v1143_v35  ;;  %v1146_v40 = vmul.f32 %v1577_v36, %v1142_v33 }
 0x7d2   :  { %v1579_v41 = vpop.eup %1578 }
 0x7d3   :  { %1232 = vst.msk [vmem:[#allocation9] sm:$0xff] %vm189_vm6, %v1214_v39  ;;  %v1229_v42 = vadd.f32 %v1496_v37, %v1146_v40  ;;  %v1145_v43 = vmul.f32 %v1579_v41, %v1141_v38 }
 0x7d5   :  { %1235 = vst.msk [vmem:[#allocation9 + $0x18] sm:$0xff] %vm189_vm6, %v1229_v42  ;;  %v1224_v45 = vadd.f32 %v1223_v44, %v1145_v43 }
 0x7d7   :  { %1234 = vst.msk [vmem:[#allocation9 + $0x10] sm:$0xff] %vm189_vm6, %v1224_v45 }
 0x7d8   :  { %1651 = shalt.err (!%p1648_p5)
}
 0x7d9   :  { %1267 = dma.vmem_to_hbm [thread:$0]  %s1262_s5, 512, %s1995_s8, [#allocation5], %s1690_s14, %s1690_s14, %s1691_s15   ;;  %vm1254_vm14 = vcmask 0  }
 0x7da   :  { %s1696_s26 = smov [#allocation10]  }
 0x7db   :  { %s1274_s27 = sshll.u32 %s1696_s26, 4  ;;  %s1275_s27 = int_to_ptr.vmem [resolvable:$true] %s1274_s27 }
 0x7dc   :  { %s1660_s28 = scalar_lea.vmem %s1275_s27, 16  ;;  %s1664_s29 = scalar_lea.vmem %s1275_s27, 32 }
 0x7dd   :  { %p1661_p6 = scmp.ne.s32.totalorder %s1275_s27, %s1660_s28  ;;  %p1665_p7 = scmp.lt.s32.totalorder %s1275_s27, %s1275_s27 }
 0x7de   :  { %p1666_p8 = scmp.lt.s32.totalorder %s1664_s29, %s1660_s28 }
 0x7e0   :  { %p1667_p9 = por %p1666_p8, %p1665_p7 }
 0x7e2   :  { %p1668_p10 = pnand %p1667_p9, %p1661_p6 }
 0x851   :  { %v1244_v46 = vpop.xlane.xlu0 %1243 }
 0x852   :  { %v1245_v47 = vrot.slane %v1244_v46, 4 }
 0x854   :  { %v1246_v48 = vadd.f32 %v1245_v47, %v1244_v46 }
 0x856   :  { %v1247_v49 = vrot.slane %v1246_v48, 2 }
 0x858   :  { %v1248_v50 = vadd.f32 %v1247_v49, %v1246_v48 }
 0x85a   :  { %v1249_v51 = vrot.slane %v1248_v50, 1 }
 0x85c   :  { %v1250_v52 = vadd.f32 %v1249_v51, %v1248_v50 }
 0x85e   :  { %1497 = vpush %v1250_v52 }
 0x88f   :  { %s1498_s7 = spop %1497 }
 0x890   :  { %v1252_v53 = vstv %s1498_s7 }
 0x891   :  { %v1253_v54 = vmul.f32 0.03125, %v1252_v53 }
 0x893   :  { %1255 = vst.msk [vmem:[#allocation10] sm:$0x1] %vm1254_vm14, %v1253_v54 }
 0x894   :  { %1671 = shalt.err (!%p1668_p10)
}
 0x895   :  { %1277 = dma.vmem_to_hbm [thread:$0]  %s1275_s27, 16, %s1996_s9, [#allocation11]  }
 0x896   :  { %1684 = dma.done.wait [#allocation5], 512  }
 0x897   :  { %1685 = vsyncadd [#allocation5], 4294966784 }
 0x898   :  { %1686 = dma.done.wait [#allocation11], 16  }
 0x899   :  { %1687 = vsyncadd [#allocation11], 4294967280 }
 0x89a   :  { %1284 = vsyncpa [#allocation4], 1 }
 0x89b   :  { %1285 = vsyncpa [#allocation7], 1 }
 0x89c   :  { %1286 = vsyncpa [#allocation5], 1 }
 0x89d   :  { %1287 = vsyncpa [#allocation11], 1 }

</bundles_post_ra>
